<compile_context>
chip_gen: v5e
topology: v5e:2x2
jax: 0.10.0
libtpu: 0.0.40
codegen_flags: <defaults>
</compile_context>

<pallas_src>
import functools

import jax
import jax.numpy as jnp
import numpy as np
from jax.experimental import pallas as pl
from jax.experimental.pallas import tpu as pltpu


def _round_up(n, m):
    return ((n + m - 1) // m) * m


# ----------------------------------------------------------------------------
# Kernel 1: fused Conv1d(k=5, pad=2) + BatchNorm(batch stats) + activation.
# Bias is omitted (cancelled exactly by the BN mean subtraction).
# ----------------------------------------------------------------------------
def conv_bn_act_kernel(x_ref, w_ref, g_ref, beta_ref, o_ref, *, K, act):
    # x_ref:  (B, T+K-1, Cin)   padded input (full block, Cin lane-dense)
    # w_ref:  (K, Cin, Ct)      bf16 weight tile over (padded) output channels
    # g_ref/beta_ref: (1, Ct)   BN gamma / beta (f32)
    # o_ref:  (B, T, Ct)
    B, T, Ct = o_ref.shape
    Cin = x_ref.shape[-1]
    x = x_ref[...].astype(jnp.bfloat16)            # bf16 MXU operands
    acc = jnp.zeros((B * T, Ct), jnp.float32)      # f32 accumulation
    # TODO(synk): build one (B*T, K*Cin) im2col operand (single deeper MXU
    # contraction, 1 VMEM copy instead of K misaligned-slice copies).
    for k in range(K):                             # static unroll over the taps
        xk = x[:, k:k + T, :].reshape(B * T, Cin)
        acc = acc + jnp.dot(xk, w_ref[k], preferred_element_type=jnp.float32)
    # BatchNorm1d (training mode): per-channel stats over the (B*T) rows.
    mean = jnp.mean(acc, axis=0, keepdims=True)
    var = jnp.mean(jnp.square(acc - mean), axis=0, keepdims=True)
    y = (acc - mean) * jax.lax.rsqrt(var + 1e-5) * g_ref[...] + beta_ref[...]
    if act == "relu":
        y = jnp.maximum(y, 0.0)
    elif act == "tanh":
        y = jnp.tanh(y)
    o_ref[...] = y.reshape(B, T, Ct).astype(o_ref.dtype)


def conv_bn_act(x, p, act, out_dtype=jnp.bfloat16):
    # x: (B, T, Cin) channels-last, Cin already lane-dense (multiple of 128).
    # p["w"]: (K, Cin, Cp) bf16 with zero rows/cols for the padded channels.
    B, T, Cin = x.shape
    K, _, Cp = p["w"].shape
    pad = (K - 1) // 2
    xpad = jnp.pad(x, ((0, 0), (pad, pad), (0, 0)))
    tile = 256 if Cp % 256 == 0 else 128           # grid >= 2 for 512-wide layers
    grid = (Cp // tile,)
    # TODO(synk): two-pass conv+BN (tiled conv accumulating sum/sumsq, then a
    # cheap normalize pass) to remove the whole-T residency for very long T.
    return pl.pallas_call(
        functools.partial(conv_bn_act_kernel, K=K, act=act),
        out_shape=jax.ShapeDtypeStruct((B, T, Cp), out_dtype),
        grid=grid,
        in_specs=[
            pl.BlockSpec((B, T + K - 1, Cin), lambda j: (0, 0, 0)),
            pl.BlockSpec((K, Cin, tile), lambda j: (0, 0, j)),
            pl.BlockSpec((1, tile), lambda j: (0, j)),
            pl.BlockSpec((1, tile), lambda j: (0, j)),
        ],
        out_specs=pl.BlockSpec((B, T, tile), lambda j: (0, 0, j)),
        compiler_params=pltpu.CompilerParams(
            dimension_semantics=("parallel",),
            vmem_limit_bytes=64 * 1024 * 1024),
    )(xpad, p["w"], p["gamma"].reshape(1, Cp), p["beta"].reshape(1, Cp))


# ----------------------------------------------------------------------------
# Kernel 2: matmul + bias (final 1024 -> 80(pad 128) projection), tiled over
# rows (parallel) and lane-dense output columns (parallel).
# ----------------------------------------------------------------------------
def linear_kernel(x_ref, w_ref, b_ref, o_ref):
    y = jnp.dot(x_ref[...].astype(jnp.bfloat16), w_ref[...],
                preferred_element_type=jnp.float32) + b_ref[...]
    o_ref[...] = y.astype(o_ref.dtype)


def linear(x2d, w, b, out_dtype):
    # x2d: (M, Din); w: (Din, Dp) bf16, Dp a multiple of 128; b: (Dp,) f32.
    M, Din = x2d.shape
    Dp = w.shape[-1]
    tile_n = 256 if Dp % 256 == 0 else 128
    tile_m = next((t for t in (512, 256, 128, 64, 32, 16, 8) if M % t == 0), M)
    grid = (M // tile_m, Dp // tile_n)
    return pl.pallas_call(
        linear_kernel,
        out_shape=jax.ShapeDtypeStruct((M, Dp), out_dtype),
        grid=grid,
        in_specs=[
            pl.BlockSpec((tile_m, Din), lambda i, j: (i, 0)),
            pl.BlockSpec((Din, tile_n), lambda i, j: (0, j)),
            pl.BlockSpec((1, tile_n), lambda i, j: (0, j)),
        ],
        out_specs=pl.BlockSpec((tile_m, tile_n), lambda i, j: (i, j)),
        compiler_params=pltpu.CompilerParams(
            dimension_semantics=("parallel", "parallel"),
            vmem_limit_bytes=64 * 1024 * 1024),
    )(x2d, w, b.reshape(1, Dp))


# ----------------------------------------------------------------------------
# Kernel 3: LSTM layer (uni- or bidirectional) with the input projection fused.
# grid = (num_dirs, num_time_blocks): the direction axis is "parallel" (v7x:
# one direction per TensorCore), the time axis is the sequential recurrence.
# One grid step projects a whole (B, TT, Din) block through W_ih on the MXU and
# then unrolls TT recurrence steps with h/c carried in per-direction VMEM
# scratch.  The backward direction picks its time blocks in reverse via the
# index_map and reverses the static in-block order.
# ----------------------------------------------------------------------------
def lstm_kernel(x_ref, wih_ref, whh_ref, b_ref, o_ref, h_sc, c_sc, *, num_dirs):
    # x_ref:   (B, TT, Dinp) bf16 input time block (lane-dense Dinp)
    # wih_ref: (1, Dinp, 4*Hp) bf16   (direction d)
    # whh_ref: (1, Hp, 4*Hp)  bf16    (direction d)
    # b_ref:   (1, 1, 4*Hp)   f32     (direction d, b_ih + b_hh)
    # o_ref:   (B, TT, Hp)    hidden states for direction d (lane-dense Hp)
    # h_sc/c_sc: (num_dirs, B, Hp) f32 carries
    B, TT, Hp = o_ref.shape
    Dinp = x_ref.shape[-1]
    d = pl.program_id(0)
    tb = pl.program_id(1)

    # Fused input projection for the whole time block (one MXU matmul).
    xp = jnp.dot(x_ref[...].reshape(B * TT, Dinp).astype(jnp.bfloat16),
                 wih_ref[0], preferred_element_type=jnp.float32)
    xp = (xp + b_ref[0]).reshape(B, TT, 4 * Hp)
    whh = whh_ref[0]

    def run_direction(di, reverse):
        @pl.when(tb == 0)
        def _():
            h_sc[di] = jnp.zeros((B, Hp), jnp.float32)
            c_sc[di] = jnp.zeros((B, Hp), jnp.float32)

        h = h_sc[di]
        c = c_sc[di]
        # TODO(synk): buffer 8 timesteps of h and store them as one dense
        # (B, 8, Hp) chunk (v5e has a single vector-store slot).
        for i in range(TT):                    # static unroll over the block
            t = TT - 1 - i if reverse else i
            gates = xp[:, t, :] + jnp.dot(h.astype(jnp.bfloat16), whh,
                                          preferred_element_type=jnp.float32)
            # PyTorch gate order: i, f, g, o
            i_g = jax.nn.sigmoid(gates[:, 0:Hp])
            f_g = jax.nn.sigmoid(gates[:, Hp:2 * Hp])
            g_g = jnp.tanh(gates[:, 2 * Hp:3 * Hp])
            o_g = jax.nn.sigmoid(gates[:, 3 * Hp:])
            c = f_g * c + i_g * g_g
            h = o_g * jnp.tanh(c)
            o_ref[:, t, :] = h.astype(o_ref.dtype)
        h_sc[di] = h
        c_sc[di] = c

    if num_dirs == 1:
        run_direction(0, False)
    else:
        @pl.when(d == 0)
        def _():
            run_direction(0, False)

        @pl.when(d == 1)
        def _():
            run_direction(1, True)


def lstm_layer(x_btd, p, TT, out_dtype=jnp.bfloat16):
    # x_btd: (B, T, Dinp) lane-dense input -> (B, T, num_dirs*Hp) lane-dense.
    B, T, Dinp = x_btd.shape
    D = p["num_dirs"]
    Hp = p["hp"]
    G = 4 * Hp
    nTb = T // TT

    def time_block(d, tb):
        # forward: tb; backward: nTb - 1 - tb   (pure index_map, no HBM flips)
        return tb + d * (nTb - 1 - 2 * tb)

    return pl.pallas_call(
        functools.partial(lstm_kernel, num_dirs=D),
        out_shape=jax.ShapeDtypeStruct((B, T, D * Hp), out_dtype),
        grid=(D, nTb),
        in_specs=[
            pl.BlockSpec((B, TT, Dinp), lambda d, tb: (0, time_block(d, tb), 0)),
            pl.BlockSpec((1, Dinp, G), lambda d, tb: (d, 0, 0)),
            pl.BlockSpec((1, Hp, G), lambda d, tb: (d, 0, 0)),
            pl.BlockSpec((1, 1, G), lambda d, tb: (d, 0, 0)),
        ],
        out_specs=pl.BlockSpec((B, TT, Hp),
                               lambda d, tb: (0, time_block(d, tb), d)),
        scratch_shapes=[pltpu.VMEM((D, B, Hp), jnp.float32),
                        pltpu.VMEM((D, B, Hp), jnp.float32)],
        compiler_params=pltpu.CompilerParams(
            dimension_semantics=("parallel", "arbitrary"),
            vmem_limit_bytes=64 * 1024 * 1024),
    )(x_btd, p["wih"], p["whh"], p["b"])


# ----------------------------------------------------------------------------
# Parameter init (deterministic; shapes mirror the PyTorch module, weights are
# zero-padded to lane-dense widths on BOTH input and output and stored bf16).
# ----------------------------------------------------------------------------
def init_conv(key, cin, cin_pad, cout, k, gain):
    fan_in, fan_out = cin * k, cout * k
    bound = gain * np.sqrt(6.0 / (fan_in + fan_out))        # xavier_uniform
    w = jax.random.uniform(key, (k, cin, cout), jnp.float32, -bound, bound)
    cp = _round_up(cout, 128)
    # conv bias omitted: exactly cancelled by the BN batch-mean subtraction.
    w = jnp.pad(w, ((0, 0), (0, cin_pad - cin), (0, cp - cout)))
    return {"w": w.astype(jnp.bfloat16),
            "gamma": jnp.ones((cp,), jnp.float32),
            "beta": jnp.zeros((cp,), jnp.float32),
            "cout": cout, "cp": cp}


def init_lstm_dir(key, in_segments, h):
    # in_segments: list of (real, padded) input-channel segments (concat order).
    k1, k2, k3, k4 = jax.random.split(key, 4)
    kk = 1.0 / np.sqrt(h)
    hp = _round_up(h, 128)
    din = sum(r for r, _ in in_segments)
    dinp = sum(p for _, p in in_segments)
    wih = jax.random.uniform(k1, (din, 4, h), jnp.float32, -kk, kk)
    whh = jax.random.uniform(k2, (h, 4, h), jnp.float32, -kk, kk)
    b = (jax.random.uniform(k3, (4, h), jnp.float32, -kk, kk)
         + jax.random.uniform(k4, (4, h), jnp.float32, -kk, kk))  # b_ih + b_hh
    # Zero-pad each gate's hidden dim h -> hp (lane-dense 4*hp layout).  The
    # padded hidden channels stay exactly 0 through the whole recurrence.
    wih = jnp.pad(wih, ((0, 0), (0, 0), (0, hp - h))).reshape(din, 4 * hp)
    whh = jnp.pad(whh, ((0, hp - h), (0, 0), (0, hp - h))).reshape(hp, 4 * hp)
    b = jnp.pad(b, ((0, 0), (0, hp - h))).reshape(4 * hp)
    # Scatter the real input rows into their padded (lane-dense) positions.
    wih_p = jnp.zeros((dinp, 4 * hp), jnp.float32)
    r_off = p_off = 0
    for real, padded in in_segments:
        wih_p = wih_p.at[p_off:p_off + real].set(wih[r_off:r_off + real])
        r_off += real
        p_off += padded
    return {"wih": wih_p.astype(jnp.bfloat16),
            "whh": whh.astype(jnp.bfloat16), "b": b, "h": h, "hp": hp}


def init_lstm_layer(key, in_segments, h, bidirectional):
    D = 2 if bidirectional else 1
    keys = jax.random.split(key, D)
    dirs = [init_lstm_dir(keys[i], in_segments, h) for i in range(D)]
    return {"wih": jnp.stack([d_["wih"] for d_ in dirs]),
            "whh": jnp.stack([d_["whh"] for d_ in dirs]),
            "b": jnp.stack([d_["b"] for d_ in dirs])[:, None, :],
            "h": h, "hp": dirs[0]["hp"], "num_dirs": D}


def init_linear(key, din, dout, gain):
    kw, kb = jax.random.split(key)
    bound = gain * np.sqrt(6.0 / (din + dout))
    w = jax.random.uniform(kw, (din, dout), jnp.float32, -bound, bound)
    bb = 1.0 / np.sqrt(din)
    b = jax.random.uniform(kb, (dout,), jnp.float32, -bb, bb)
    dp = _round_up(dout, 128)
    return {"w": jnp.pad(w, ((0, 0), (0, dp - dout))).astype(jnp.bfloat16),
            "b": jnp.pad(b, (0, dp - dout)), "dout": dout}


def init_params(key, dim_neck, dim_emb, dim_pre):
    keys = iter(jax.random.split(key, 40))
    g_relu, g_tanh = np.sqrt(2.0), 5.0 / 3.0
    cin0 = 80 + dim_emb
    cin0_pad = _round_up(cin0, 128)
    hp_neck = _round_up(dim_neck, 128)
    hp_pre = _round_up(dim_pre, 128)
    enc_convs = [init_conv(next(keys), cin0, cin0_pad, 512, 5, g_relu)]
    enc_convs += [init_conv(next(keys), 512, 512, 512, 5, g_relu) for _ in range(2)]
    enc_lstm = [
        init_lstm_layer(next(keys), [(512, 512)], dim_neck, True),
        init_lstm_layer(next(keys), [(dim_neck, hp_neck), (dim_neck, hp_neck)],
                        dim_neck, True),
    ]
    dec_in = 2 * dim_neck + dim_emb
    dec_in_pad = _round_up(dec_in, 128)
    dec_lstm1 = init_lstm_layer(next(keys), [(dec_in, dec_in_pad)], dim_pre, False)
    dec_convs = [init_conv(next(keys), dim_pre, hp_pre, dim_pre, 5, g_relu)
                 for _ in range(3)]
    dec_lstm2 = [
        init_lstm_layer(next(keys), [(dim_pre, hp_pre)], 1024, False),
        init_lstm_layer(next(keys), [(1024, 1024)], 1024, False),
    ]
    proj = init_linear(next(keys), 1024, 80, 1.0)
    post_convs = [init_conv(next(keys), 80, 128, 512, 5, g_tanh)]
    post_convs += [init_conv(next(keys), 512, 512, 512, 5, g_tanh) for _ in range(3)]
    post_convs.append(init_conv(next(keys), 512, 512, 80, 5, 1.0))
    return {"encoder": {"convs": enc_convs, "lstm": enc_lstm, "cin_pad": cin0_pad},
            "decoder": {"lstm1": dec_lstm1, "convs": dec_convs,
                        "lstm2": dec_lstm2, "proj": proj, "in_pad": dec_in_pad},
            "postnet": {"convs": post_convs}}


# ----------------------------------------------------------------------------
# Forward passes (glue in plain JAX, compute in Pallas kernels)
# ----------------------------------------------------------------------------
def pick_time_block(T, max_tt=64):
    # Largest TT <= max_tt dividing T that is a multiple of 8 (sublane-aligned
    # blocks, bounded static unroll).
    for tt in range(min(T, max_tt), 7, -1):
        if T % tt == 0 and tt % 8 == 0:
            return tt
    # TODO(synk): for awkward T (no multiple-of-8 divisor <= max_tt), pad T and
    # mask the padded steps in the backward direction instead of full unroll.
    return T


def encoder_forward(p, x, c_org, dim_neck, freq, TT):
    B, T, _ = x.shape
    c = jnp.broadcast_to(c_org[:, None, :], (B, T, c_org.shape[-1]))
    h = jnp.concatenate([x, c], axis=-1)                         # (B, T, 80+demb)
    h = jnp.pad(h, ((0, 0), (0, 0), (0, p["cin_pad"] - h.shape[-1])))
    h = h.astype(jnp.bfloat16)
    for cp_ in p["convs"]:
        h = conv_bn_act(h, cp_, "relu")                          # (B, T, 512)
    for layer in p["lstm"]:
        h = lstm_layer(h, layer, TT)                             # (B, T, 2*Hp)
    Hp = p["lstm"][-1]["hp"]
    out_f, out_b = h[:, :, :Hp], h[:, :, Hp:]
    nC = T // freq
    # Vectorised codes extraction (forward: last frame of each block, backward:
    # first frame) instead of a Python loop of tiny slices/concats.
    f_sel = out_f.reshape(B, nC, freq, Hp)[:, :, freq - 1, :dim_neck]
    b_sel = out_b.reshape(B, nC, freq, Hp)[:, :, 0, :dim_neck]
    codes = jnp.concatenate([f_sel, b_sel], axis=-1).astype(jnp.float32)
    return codes                                                 # (B, nC, 2*dn)


def decoder_forward(p, x, TT):
    B, T, din = x.shape
    xpad = jnp.pad(x, ((0, 0), (0, 0), (0, p["in_pad"] - din))).astype(jnp.bfloat16)
    h = lstm_layer(xpad, p["lstm1"], TT)                         # (B, T, 128)
    for cp_ in p["convs"]:
        h = conv_bn_act(h, cp_, "relu")                          # (B, T, 128)
    # TODO(synk): on v7x, pipeline the two stacked 1024-wide LSTM layers across
    # the two TensorCores with a one-time-block stagger (core_map/CMEM handoff).
    for layer in p["lstm2"]:
        h = lstm_layer(h, layer, TT)                             # (B, T, 1024)
    M = B * T
    out = linear(h.reshape(M, h.shape[-1]), p["proj"]["w"], p["proj"]["b"],
                 jnp.float32)
    return out.reshape(B, T, -1)                                 # (B, T, 128) padded mel


def postnet_forward(p, mel_pad):
    # mel_pad: (B, T, 128) f32 padded mel (channels 80..127 are exactly zero).
    h = mel_pad.astype(jnp.bfloat16)
    for cp_ in p["convs"][:-1]:
        h = conv_bn_act(h, cp_, "tanh")
    return conv_bn_act(h, p["convs"][-1], "none", out_dtype=jnp.float32)


def generator_forward(params, x, c_org, c_trg, dim_neck, freq):
    B, T, _ = x.shape
    TT = pick_time_block(T)
    codes = encoder_forward(params["encoder"], x, c_org, dim_neck, freq, TT)
    codes_cat = codes.reshape(B, -1)
    if c_trg is None:
        return codes_cat
    nC = codes.shape[1]
    rep = T // nC
    code_exp = jnp.broadcast_to(codes[:, :, None, :],
                                (B, nC, rep, codes.shape[-1])).reshape(B, T, -1)
    ctrg_exp = jnp.broadcast_to(c_trg[:, None, :], (B, T, c_trg.shape[-1]))
    enc_out = jnp.concatenate([code_exp, ctrg_exp], axis=-1)     # (B, T, 2dn+demb)
    mel_pad = decoder_forward(params["decoder"], enc_out, TT)    # (B, T, 128) f32
    post_pad = postnet_forward(params["postnet"], mel_pad)       # (B, T, 128) f32
    mel = mel_pad[:, :, :80]
    mel_post = (mel_pad + post_pad)[:, :, :80]
    return mel, mel_post, codes_cat


if __name__ == "__main__":
    dim_neck, dim_emb, dim_pre, freq = 8, 16, 32, 4
    B, T = 2, 8                                                  # T multiple of freq
    key = jax.random.PRNGKey(0)
    kp, kx, kco, kct = jax.random.split(key, 4)
    params = init_params(kp, dim_neck, dim_emb, dim_pre)
    x = jax.random.normal(kx, (B, T, 80), jnp.float32)           # mel (B, T, 80)
    c_org = jax.random.normal(kco, (B, dim_emb), jnp.float32)
    c_trg = jax.random.normal(kct, (B, dim_emb), jnp.float32)

    mel, mel_post, codes = generator_forward(params, x, c_org, c_trg, dim_neck, freq)
    jax.block_until_ready((mel, mel_post, codes))

    assert mel.shape == (B, T, 80)
    assert mel_post.shape == (B, T, 80)
    assert codes.shape == (B, (T // freq) * 2 * dim_neck)
    assert bool(jnp.all(jnp.isfinite(mel_post)))
    print("KERNEL_OK")
</pallas_src>

<mosaic_0001>
module attributes {stable_mosaic.version = 11 : i64} {
  func.func @conv_bn_act_kernel(%arg0: i32, %arg1: memref<2x12x128xbf16, #tpu.memory_space<vmem>>, %arg2: memref<5x128x256xbf16, #tpu.memory_space<vmem>>, %arg3: memref<1x256xf32, #tpu.memory_space<vmem>>, %arg4: memref<1x256xf32, #tpu.memory_space<vmem>>, %arg5: memref<2x8x256xbf16, #tpu.memory_space<vmem>>) attributes {dimension_semantics = [#tpu.dimension_semantics<parallel>], iteration_bounds = array<i64: 2>, scalar_prefetch = 0 : i64, scratch_operands = 0 : i64, tpu.core_type = #tpu.core_type<tc>, window_params = [{pipeline_mode = #tpu.pipeline_mode<synchronous>, transform_indices = @transform_0, window_bounds = array<i64: 2, 12, 128>}, {transform_indices = @transform_1, window_bounds = array<i64: 5, 128, 256>}, {transform_indices = @transform_2, window_bounds = array<i64: 1, 256>}, {transform_indices = @transform_3, window_bounds = array<i64: 1, 256>}, {transform_indices = @transform_4, window_bounds = array<i64: 2, 8, 256>}]} {
    %c0 = arith.constant 0 : index
    %c0_0 = arith.constant 0 : index
    %c0_1 = arith.constant 0 : index
    %0 = vector.load %arg1[%c0, %c0_0, %c0_1] : memref<2x12x128xbf16, #tpu.memory_space<vmem>>, vector<2x12x128xbf16>
    %cst = arith.constant 0.000000e+00 : f32
    %1 = vector.broadcast %cst : f32 to vector<16x256xf32>
    %2 = vector.extract_strided_slice %0 {offsets = [0, 0, 0], sizes = [2, 8, 128], strides = [1, 1, 1]} : vector<2x12x128xbf16> to vector<2x8x128xbf16>
    %3 = vector.shape_cast %2 : vector<2x8x128xbf16> to vector<16x128xbf16>
    %c0_2 = arith.constant 0 : index
    %c0_3 = arith.constant 0 : index
    %c0_4 = arith.constant 0 : index
    %4 = vector.load %arg2[%c0_2, %c0_3, %c0_4] : memref<5x128x256xbf16, #tpu.memory_space<vmem>>, vector<1x128x256xbf16>
    %5 = vector.shape_cast %4 : vector<1x128x256xbf16> to vector<128x256xbf16>
    %cst_5 = arith.constant dense<0.000000e+00> : vector<16x256xf32>
    %6 = tpu.matmul %3, %5, %cst_5 {dimension_numbers = #tpu.dot_dimension_numbers<[1], [0], [0], [1], [0, 0, 1, 1], [], []>} : vector<16x128xbf16>, vector<128x256xbf16>, vector<16x256xf32> -> vector<16x256xf32>
    %7 = arith.addf %1, %6 : vector<16x256xf32>
    %8 = vector.extract_strided_slice %0 {offsets = [0, 1, 0], sizes = [2, 8, 128], strides = [1, 1, 1]} : vector<2x12x128xbf16> to vector<2x8x128xbf16>
    %9 = vector.shape_cast %8 : vector<2x8x128xbf16> to vector<16x128xbf16>
    %c1 = arith.constant 1 : index
    %c0_6 = arith.constant 0 : index
    %c0_7 = arith.constant 0 : index
    %10 = vector.load %arg2[%c1, %c0_6, %c0_7] : memref<5x128x256xbf16, #tpu.memory_space<vmem>>, vector<1x128x256xbf16>
    %11 = vector.shape_cast %10 : vector<1x128x256xbf16> to vector<128x256xbf16>
    %cst_8 = arith.constant dense<0.000000e+00> : vector<16x256xf32>
    %12 = tpu.matmul %9, %11, %cst_8 {dimension_numbers = #tpu.dot_dimension_numbers<[1], [0], [0], [1], [0, 0, 1, 1], [], []>} : vector<16x128xbf16>, vector<128x256xbf16>, vector<16x256xf32> -> vector<16x256xf32>
    %13 = arith.addf %7, %12 : vector<16x256xf32>
    %14 = vector.extract_strided_slice %0 {offsets = [0, 2, 0], sizes = [2, 8, 128], strides = [1, 1, 1]} : vector<2x12x128xbf16> to vector<2x8x128xbf16>
    %15 = vector.shape_cast %14 : vector<2x8x128xbf16> to vector<16x128xbf16>
    %c2 = arith.constant 2 : index
    %c0_9 = arith.constant 0 : index
    %c0_10 = arith.constant 0 : index
    %16 = vector.load %arg2[%c2, %c0_9, %c0_10] : memref<5x128x256xbf16, #tpu.memory_space<vmem>>, vector<1x128x256xbf16>
    %17 = vector.shape_cast %16 : vector<1x128x256xbf16> to vector<128x256xbf16>
    %cst_11 = arith.constant dense<0.000000e+00> : vector<16x256xf32>
    %18 = tpu.matmul %15, %17, %cst_11 {dimension_numbers = #tpu.dot_dimension_numbers<[1], [0], [0], [1], [0, 0, 1, 1], [], []>} : vector<16x128xbf16>, vector<128x256xbf16>, vector<16x256xf32> -> vector<16x256xf32>
    %19 = arith.addf %13, %18 : vector<16x256xf32>
    %20 = vector.extract_strided_slice %0 {offsets = [0, 3, 0], sizes = [2, 8, 128], strides = [1, 1, 1]} : vector<2x12x128xbf16> to vector<2x8x128xbf16>
    %21 = vector.shape_cast %20 : vector<2x8x128xbf16> to vector<16x128xbf16>
    %c3 = arith.constant 3 : index
    %c0_12 = arith.constant 0 : index
    %c0_13 = arith.constant 0 : index
    %22 = vector.load %arg2[%c3, %c0_12, %c0_13] : memref<5x128x256xbf16, #tpu.memory_space<vmem>>, vector<1x128x256xbf16>
    %23 = vector.shape_cast %22 : vector<1x128x256xbf16> to vector<128x256xbf16>
    %cst_14 = arith.constant dense<0.000000e+00> : vector<16x256xf32>
    %24 = tpu.matmul %21, %23, %cst_14 {dimension_numbers = #tpu.dot_dimension_numbers<[1], [0], [0], [1], [0, 0, 1, 1], [], []>} : vector<16x128xbf16>, vector<128x256xbf16>, vector<16x256xf32> -> vector<16x256xf32>
    %25 = arith.addf %19, %24 : vector<16x256xf32>
    %26 = vector.extract_strided_slice %0 {offsets = [0, 4, 0], sizes = [2, 8, 128], strides = [1, 1, 1]} : vector<2x12x128xbf16> to vector<2x8x128xbf16>
    %27 = vector.shape_cast %26 : vector<2x8x128xbf16> to vector<16x128xbf16>
    %c4 = arith.constant 4 : index
    %c0_15 = arith.constant 0 : index
    %c0_16 = arith.constant 0 : index
    %28 = vector.load %arg2[%c4, %c0_15, %c0_16] : memref<5x128x256xbf16, #tpu.memory_space<vmem>>, vector<1x128x256xbf16>
    %29 = vector.shape_cast %28 : vector<1x128x256xbf16> to vector<128x256xbf16>
    %cst_17 = arith.constant dense<0.000000e+00> : vector<16x256xf32>
    %30 = tpu.matmul %27, %29, %cst_17 {dimension_numbers = #tpu.dot_dimension_numbers<[1], [0], [0], [1], [0, 0, 1, 1], [], []>} : vector<16x128xbf16>, vector<128x256xbf16>, vector<16x256xf32> -> vector<16x256xf32>
    %31 = arith.addf %25, %30 : vector<16x256xf32>
    %cst_18 = arith.constant dense<0.000000e+00> : vector<256xf32>
    %32 = vector.multi_reduction <add>, %31, %cst_18 [0] : vector<16x256xf32> to vector<256xf32>
    %33 = vector.shape_cast %32 : vector<256xf32> to vector<1x256xf32>
    %cst_19 = arith.constant 1.600000e+01 : f32
    %34 = vector.broadcast %cst_19 : f32 to vector<1x256xf32>
    %35 = arith.divf %33, %34 : vector<1x256xf32>
    %36 = vector.broadcast %35 : vector<1x256xf32> to vector<16x256xf32>
    %37 = arith.subf %31, %36 : vector<16x256xf32>
    %38 = arith.mulf %37, %37 : vector<16x256xf32>
    %cst_20 = arith.constant dense<0.000000e+00> : vector<256xf32>
    %39 = vector.multi_reduction <add>, %38, %cst_20 [0] : vector<16x256xf32> to vector<256xf32>
    %40 = vector.shape_cast %39 : vector<256xf32> to vector<1x256xf32>
    %cst_21 = arith.constant 1.600000e+01 : f32
    %41 = vector.broadcast %cst_21 : f32 to vector<1x256xf32>
    %42 = arith.divf %40, %41 : vector<1x256xf32>
    %43 = vector.broadcast %35 : vector<1x256xf32> to vector<16x256xf32>
    %44 = arith.subf %31, %43 : vector<16x256xf32>
    %cst_22 = arith.constant 9.99999974E-6 : f32
    %45 = vector.broadcast %cst_22 : f32 to vector<1x256xf32>
    %46 = arith.addf %42, %45 : vector<1x256xf32>
    %47 = math.rsqrt %46 : vector<1x256xf32>
    %48 = vector.broadcast %47 : vector<1x256xf32> to vector<16x256xf32>
    %49 = arith.mulf %44, %48 : vector<16x256xf32>
    %c0_23 = arith.constant 0 : index
    %c0_24 = arith.constant 0 : index
    %50 = vector.load %arg3[%c0_23, %c0_24] : memref<1x256xf32, #tpu.memory_space<vmem>>, vector<1x256xf32>
    %51 = vector.broadcast %50 : vector<1x256xf32> to vector<16x256xf32>
    %52 = arith.mulf %49, %51 : vector<16x256xf32>
    %c0_25 = arith.constant 0 : index
    %c0_26 = arith.constant 0 : index
    %53 = vector.load %arg4[%c0_25, %c0_26] : memref<1x256xf32, #tpu.memory_space<vmem>>, vector<1x256xf32>
    %54 = vector.broadcast %53 : vector<1x256xf32> to vector<16x256xf32>
    %55 = arith.addf %52, %54 : vector<16x256xf32>
    %cst_27 = arith.constant 0.000000e+00 : f32
    %56 = vector.broadcast %cst_27 : f32 to vector<16x256xf32>
    %57 = arith.maximumf %55, %56 : vector<16x256xf32>
    %58 = vector.shape_cast %57 : vector<16x256xf32> to vector<2x8x256xf32>
    %59 = arith.truncf %58 : vector<2x8x256xf32> to vector<2x8x256xbf16>
    %c0_28 = arith.constant 0 : index
    %c0_29 = arith.constant 0 : index
    %c0_30 = arith.constant 0 : index
    %60 = vector.load %arg5[%c0_28, %c0_29, %c0_30] : memref<2x8x256xbf16, #tpu.memory_space<vmem>>, vector<2x8x256xbf16>
    tpu.vector_store %arg5[%c0_28, %c0_29, %c0_30], %59 {strides = array<i32>} : memref<2x8x256xbf16, #tpu.memory_space<vmem>>, vector<2x8x256xbf16>,
    return
  }
  func.func @transform_0(%arg0: i32) -> (i32, i32, i32) {
    %c0_i32 = arith.constant 0 : i32
    %c0_i32_0 = arith.constant 0 : i32
    %c0_i32_1 = arith.constant 0 : i32
    %c0_i32_2 = arith.constant 0 : i32
    return %c0_i32, %c0_i32_0, %c0_i32_1 : i32, i32, i32
  }
  func.func @transform_1(%arg0: i32) -> (i32, i32, i32) {
    %c0_i32 = arith.constant 0 : i32
    %c0_i32_0 = arith.constant 0 : i32
    %c0_i32_1 = arith.constant 0 : i32
    return %c0_i32, %c0_i32_0, %arg0 : i32, i32, i32
  }
  func.func @transform_2(%arg0: i32) -> (i32, i32) {
    %c0_i32 = arith.constant 0 : i32
    %c0_i32_0 = arith.constant 0 : i32
    return %c0_i32, %arg0 : i32, i32
  }
  func.func @transform_3(%arg0: i32) -> (i32, i32) {
    %c0_i32 = arith.constant 0 : i32
    %c0_i32_0 = arith.constant 0 : i32
    return %c0_i32, %arg0 : i32, i32
  }
  func.func @transform_4(%arg0: i32) -> (i32, i32, i32) {
    %c0_i32 = arith.constant 0 : i32
    %c0_i32_0 = arith.constant 0 : i32
    %c0_i32_1 = arith.constant 0 : i32
    return %c0_i32, %c0_i32_0, %arg0 : i32, i32, i32
  }
}

</mosaic_0001>

<bundles_post_ra>
// kernel: tpu_custom_call.1
= control target key start
LH: loop header
LB: loop body
LE: loop exit
PB: predicated region body
PF: predicated region fallthrough
CT: control target
= control target key end

     0   :  { %9 = vsyncpa [#allocation3], 0  ;;  %s2277_s0 = inlined_call_operand.vmem [shape: bf16[2,12,128], index: 0, kind: input, shape index: {}]   ;;  %s2278_s1 = inlined_call_operand.hbm [shape: bf16[5,128,512], index: 1, kind: input, shape index: {}]   ;;  %s2279_s2 = inlined_call_operand.vmem [shape: f32[1,512], index: 2, kind: input, shape index: {}]   ;;  %s2280_s3 = inlined_call_operand.vmem [shape: f32[1,512], index: 3, kind: input, shape index: {}]   ;;  %s2281_s4 = inlined_call_operand.hbm [shape: bf16[2,8,512], index: 4, kind: output, shape index: {}]  }
   0x1   :  { %11 = vsyncpa [#allocation3 + $0x1], 0 }
   0x2   :  { %12 = vsyncpa [#allocation4], 0 }
   0x3   :  { %14 = vsyncpa [#allocation4 + $0x1], 0  ;;  %s1886_s15 = smov 0   ;;  %s1888_s16 = smov 0  }
   0x4   :  { %s1890_s17 = smov 0   ;;  %s1892_s18 = smov 0  }
   0x5 LB: > { %s1907_s19 = sadd.s32 4294967295, %s1852_s18   ;;  %s1206_s20 = sadd.s32 4294967294, %s1852_s18   ;;  %s1852_s18 = sphi %s1892_s18, %s2295_s18   ;;  %s1848_s17 = sphi %s1890_s17, %s2294_s17   ;;  %s1844_s16 = sphi %s1888_s16, %s2293_s16   ;;  %s1840_s15 = sphi %s1886_s15, %s2292_s15  }
   0x6   : > { %s1911_s21 = sadd.s32 1, %s1852_s18   ;;  %s48_s22 = sadd.s32 1, %s1848_s17 }
   0x7   : > { %s45_s23 = ssub.s32 %s1852_s18, %s1911_s21  ;;  %p55_p0 = scmp.ne.s32.totalorder %s1848_s17, %s1844_s16 }
   0x8   : > { %p46_p1 = scmp.eq.s32.totalorder %s45_s23, 0  ;;  %p56_p2 = scmp.eq.s32.totalorder %s1852_s18, 0 }
   0x9   : > { %p61_p3 = scmp.ne.s32.totalorder %s1844_s16, %s1840_s15  ;;  %p62_p4 = scmp.eq.s32.totalorder %s1907_s19, 0 }
   0xa   : > { %s1923_s24 = scalar_select %p46_p1, %s1848_s17, %s48_s22  }
   0xb   : > { %p57_p5 = por %p56_p2, %p55_p0  ;;  %p1925_p6 = por %p62_p4, %p61_p3 }
   0xc   : > { %p137_p7 = scmp.eq.s32.totalorder %s1907_s19, 1  ;;  %p143_p8 = scmp.eq.s32.totalorder %s1206_s20, 1 }
   0xd   : > { %p1208_p9 = scmp.ge.s32.totalorder %s1852_s18, 2  ;;  %p1709_p10 = scmp.lt.s32.totalorder %s1852_s18, 2 }
   0xe   : > { %p1932_p11 = por %p137_p7, %p55_p0  ;;  %p1936_p12 = por %p143_p8, %p61_p3 }
   0xf   : > { %s166_s28 = sand.u32 1, %s1848_s17   ;;  %s1612_s29 = sshll.u32 %s1852_s18, 3 }
  0x10   : > { %s1695_s30 = smul.u32 640, %s166_s28  ;;  %s175_s7 = scalar_lea.hbm %s2278_s1, %s1612_s29 }
  0x11   : > { %p1945_p13 = pnand %p1709_p10, %p57_p5  ;;  %s176_s9 = sshll.u32 %s175_s7, 4  ;;  %s177_s9 = int_to_ptr.hbm [resolvable:$true] %s176_s9 }
  0x12   : > { %s170_s10 = scalar_lea.vmem [#allocation2], %s1695_s30  ;;  %p1211_p0 = scmp.ge.s32.totalorder %s1852_s18, 1 }
  0x13   : > { %s178_s11 = sshll.u32 %s170_s10, 4  ;;  %s167_s12 = scalar_lea.sflag [#allocation3], %s166_s28  ;;  %s179_s11 = int_to_ptr.vmem [resolvable:$true] %s178_s11 }
  0x14   : > { %s1756_s13 = sshra.s32 %s177_s9, 4  ;;  %p1760_p2 = pneg %p1945_p13  ;;  %s1757_s13 = int_to_ptr.hbm [resolvable:$true] %s1756_s13 }
  0x15   : > { %s1758_s14 = scalar_lea.hbm %s1757_s13, 640  ;;  %s1763_s23 = scalar_lea.hbm %s2278_s1, 1280 }
  0x16   : > { %p1759_p1 = scmp.ne.s32.totalorder %s1757_s13, %s1758_s14  ;;  %p1764_p5 = scmp.lt.s32.totalorder %s1757_s13, %s2278_s1 }
  0x17   : > { %p1765_p7 = scmp.lt.s32.totalorder %s1763_s23, %s1758_s14 }
  0x18   : > { %p1761_p3 = pnand %p1760_p2, %p1759_p1 }
  0x19   : > { %p1766_p8 = por %p1765_p7, %p1764_p5 }
  0x1a   : > { %p1762_p4 = pneg %p1761_p3 }
  0x1c   : > { %p1767_p10 = pnand %p1766_p8, %p1762_p4 }
  0x1e   : > { %1770 = shalt.err (!%p1767_p10)
}
  0x1f   : > { %s1854_s28 = smov 256   ;;  %s1855_s30 = smov 128  }
  0x20   : > { %s1856_s6 = smov 8   ;;  %p202_p1 = scmp.lt.s32.totalorder %s1852_s18, 3 }
  0x21   : > { %1704 = dma.hbm_to_vmem [thread:$0]  (!%p1945_p13), %s177_s9, 10240, %s179_s11, %s167_s12, %s1854_s28, %s1855_s30, %s1856_s6  }
  0x22   : > { %p203_p2 = pnand %p1211_p0, %p202_p1 }
  0x23   : > { %s1964_s7 = sand.u32 (!%p203_p2), 1, %s1844_s16  }
  0x24   : > { %206 = sbr.rel (%p203_p2) target bundleno = 349 (0x15d), region = 36  ;;  %s209_s13 = scalar_lea.sflag (!%p203_p2), [#allocation3], %s1964_s7 }
  0x25   : > { %s1696_s10 = smul.u32 (!%p203_p2), 640, %s1964_s7 }
  0x27   : > { %s1968_s14 = scalar_lea.vmem (!%p203_p2), [#allocation2], %s1696_s10 }
  0x29   : > { %1831 = dma.done.wait (%p1925_p6), %s209_s13, 10240  }
  0x2a   : > { %1833 = vsyncadd (%p1925_p6), %s209_s13, 4294957056  ;;  %v1289_v0 = vld [vmem:[%s1968_s14 + $0xf0] sm:$0xf]  ;;  %v1645_v1 = vld [vmem:[%s1968_s14 + $0xf4] sm:$0xf0]  ;;  %vm554_vm3 = vcmask 1042432  }
  0x2b   : > { %v1644_v2 = vld [vmem:[%s1968_s14 + $0xf4] sm:$0xf]  ;;  %v1290_v3 = vor.u32 %v1645_v1, %v1289_v0  ;;  %v1291_v4 = vld [vmem:[%s1968_s14 + $0xf8] sm:$0xf0]  ;;  %v1357_v5 = vld [vmem:[%s1968_s14 + $0x70] sm:$0xf] }
  0x2c   : > { %v1629_v6 = vld [vmem:[%s1968_s14 + $0x74] sm:$0xf0]  ;;  %v1294_v7 = vor.u32 %v1644_v2, %v1291_v4  ;;  %v1628_v9 = vld [vmem:[%s1968_s14 + $0x74] sm:$0xf]  ;;  %v1359_v10 = vld [vmem:[%s1968_s14 + $0x78] sm:$0xf0] }
  0x2d   : > { %v1358_v8 = vor.u32 %v1629_v6, %v1357_v5  ;;  %v1281_v11 = vld [vmem:[%s1968_s14 + $0xe0] sm:$0xf]  ;;  %410 = vmatpush.bf16.msra.mxu0 %v1290_v3  ;;  %v1362_v12 = vor.u32 %v1628_v9, %v1359_v10  ;;  %v1643_v13 = vld [vmem:[%s1968_s14 + $0xe4] sm:$0xf0]  ;;  %v1642_v14 = vld [vmem:[%s1968_s14 + $0xe4] sm:$0xf] }
  0x2e   : > { %v1283_v15 = vld [vmem:[%s1968_s14 + $0xe8] sm:$0xf0]  ;;  %424 = vmatpush.bf16.msra.mxu1 %v1294_v7  ;;  %v1282_v16 = vor.u32 %v1643_v13, %v1281_v11  ;;  %v1349_v18 = vld [vmem:[%s1968_s14 + $0x60] sm:$0xf]  ;;  %v1627_v19 = vld [vmem:[%s1968_s14 + $0x64] sm:$0xf0] }
  0x2f   : > { %524 = vmatpush.bf16.msra.mxu2 %v1358_v8  ;;  %v1286_v17 = vor.u32 %v1642_v14, %v1283_v15  ;;  %v1626_v20 = vld [vmem:[%s1968_s14 + $0x64] sm:$0xf]  ;;  %538 = vmatpush.bf16.msra.mxu3 %v1362_v12  ;;  %v1350_v21 = vor.u32 %v1627_v19, %v1349_v18  ;;  %v1351_v22 = vld [vmem:[%s1968_s14 + $0x68] sm:$0xf0]  ;;  %v1273_v23 = vld [vmem:[%s1968_s14 + $0xd0] sm:$0xf] }
  0x30   : > { %v1641_v24 = vld [vmem:[%s1968_s14 + $0xd4] sm:$0xf0]  ;;  %v1354_v25 = vor.u32 %v1626_v20, %v1351_v22  ;;  %v1640_v26 = vld [vmem:[%s1968_s14 + $0xd4] sm:$0xf]  ;;  %v1275_v27 = vld [vmem:[%s1968_s14 + $0xd8] sm:$0xf0] }
  0x31   : > { %v1341_v28 = vld [vmem:[%s1968_s14 + $0x50] sm:$0xf]  ;;  %411 = vmatpush.bf16.msra.mxu0 %v1282_v16  ;;  %v1274_v29 = vor.u32 %v1641_v24, %v1273_v23  ;;  %v1625_v30 = vld [vmem:[%s1968_s14 + $0x54] sm:$0xf0]  ;;  %v1624_v31 = vld [vmem:[%s1968_s14 + $0x54] sm:$0xf]  ;;  %v1278_v33 = vor.u32 %v1640_v26, %v1275_v27 }
  0x32   : > { %v1343_v32 = vld [vmem:[%s1968_s14 + $0x58] sm:$0xf0]  ;;  %425 = vmatpush.bf16.msra.mxu1 %v1286_v17  ;;  %v1342_v34 = vor.u32 %v1625_v30, %v1341_v28  ;;  %v1265_v35 = vld [vmem:[%s1968_s14 + $0xc0] sm:$0xf]  ;;  %v1639_v36 = vld [vmem:[%s1968_s14 + $0xc4] sm:$0xf0] }
  0x33   : > { %525 = vmatpush.bf16.msra.mxu2 %v1350_v21  ;;  %v1638_v37 = vld [vmem:[%s1968_s14 + $0xc4] sm:$0xf]  ;;  %539 = vmatpush.bf16.msra.mxu3 %v1354_v25  ;;  %v1346_v38 = vor.u32 %v1624_v31, %v1343_v32  ;;  %v1267_v39 = vld [vmem:[%s1968_s14 + $0xc8] sm:$0xf0]  ;;  %v1333_v40 = vld [vmem:[%s1968_s14 + $0x40] sm:$0xf]  ;;  %v1266_v44 = vor.u32 %v1639_v36, %v1265_v35 }
  0x34   : > { %v1623_v41 = vld [vmem:[%s1968_s14 + $0x44] sm:$0xf0]  ;;  %v1622_v42 = vld [vmem:[%s1968_s14 + $0x44] sm:$0xf]  ;;  %v1335_v43 = vld [vmem:[%s1968_s14 + $0x48] sm:$0xf0]  ;;  %v1270_v45 = vor.u32 %v1638_v37, %v1267_v39 }
  0x35   : > { %412 = vmatpush.bf16.msra.mxu0 %v1274_v29  ;;  %v1334_v46 = vor.u32 %v1623_v41, %v1333_v40  ;;  %v1257_v47 = vld [vmem:[%s1968_s14 + $0xb0] sm:$0xf]  ;;  %v1637_v48 = vld [vmem:[%s1968_s14 + $0xb4] sm:$0xf0]  ;;  %v1636_v49 = vld [vmem:[%s1968_s14 + $0xb4] sm:$0xf]  ;;  %v1338_v50 = vor.u32 %v1622_v42, %v1335_v43 }
  0x36   : > { %426 = vmatpush.bf16.msra.mxu1 %v1278_v33  ;;  %v1259_v51 = vld [vmem:[%s1968_s14 + $0xb8] sm:$0xf0]  ;;  %v1325_v52 = vld [vmem:[%s1968_s14 + $0x30] sm:$0xf]  ;;  %v1621_v53 = vld [vmem:[%s1968_s14 + $0x34] sm:$0xf0]  ;;  %v1258_v56 = vor.u32 %v1637_v48, %v1257_v47 }
  0x37   : > { %526 = vmatpush.bf16.msra.mxu2 %v1342_v34  ;;  %540 = vmatpush.bf16.msra.mxu3 %v1346_v38  ;;  %v1620_v54 = vld [vmem:[%s1968_s14 + $0x34] sm:$0xf]  ;;  %v1327_v55 = vld [vmem:[%s1968_s14 + $0x38] sm:$0xf0]  ;;  %v1262_v57 = vor.u32 %v1636_v49, %v1259_v51  ;;  %v1326_v58 = vor.u32 %v1621_v53, %v1325_v52  ;;  %v1249_v59 = vld [vmem:[%s1968_s14 + $0xa0] sm:$0xf] }
  0x38   : > { %v1635_v60 = vld [vmem:[%s1968_s14 + $0xa4] sm:$0xf0]  ;;  %v1634_v61 = vld [vmem:[%s1968_s14 + $0xa4] sm:$0xf]  ;;  %v1330_v62 = vor.u32 %v1620_v54, %v1327_v55  ;;  %v1251_v63 = vld [vmem:[%s1968_s14 + $0xa8] sm:$0xf0] }
  0x39   : > { %413 = vmatpush.bf16.msra.mxu0 %v1266_v44  ;;  %v1317_v0 = vld [vmem:[%s1968_s14 + $0x20] sm:$0xf]  ;;  %v1619_v1 = vld [vmem:[%s1968_s14 + $0x24] sm:$0xf0]  ;;  %v1618_v2 = vld [vmem:[%s1968_s14 + $0x24] sm:$0xf]  ;;  %v1250_v4 = vor.u32 %v1635_v60, %v1249_v59  ;;  %v1254_v5 = vor.u32 %v1634_v61, %v1251_v63 }
  0x3a   : > { %427 = vmatpush.bf16.msra.mxu1 %v1270_v45  ;;  %v1319_v3 = vld [vmem:[%s1968_s14 + $0x28] sm:$0xf0]  ;;  %v1318_v6 = vor.u32 %v1619_v1, %v1317_v0  ;;  %v1241_v7 = vld [vmem:[%s1968_s14 + $0x90] sm:$0xf]  ;;  %v1633_v8 = vld [vmem:[%s1968_s14 + $0x94] sm:$0xf0] }
  0x3b   : > { %527 = vmatpush.bf16.msra.mxu2 %v1334_v46  ;;  %541 = vmatpush.bf16.msra.mxu3 %v1338_v50  ;;  %v1632_v9 = vld [vmem:[%s1968_s14 + $0x94] sm:$0xf]  ;;  %v1322_v10 = vor.u32 %v1618_v2, %v1319_v3  ;;  %v1243_v11 = vld [vmem:[%s1968_s14 + $0x98] sm:$0xf0]  ;;  %v1309_v12 = vld [vmem:[%s1968_s14 + $0x10] sm:$0xf]  ;;  %v1242_v16 = vor.u32 %v1633_v8, %v1241_v7 }
  0x3c   : > { %v1617_v13 = vld [vmem:[%s1968_s14 + $0x14] sm:$0xf0]  ;;  %v1616_v14 = vld [vmem:[%s1968_s14 + $0x14] sm:$0xf]  ;;  %v1311_v15 = vld [vmem:[%s1968_s14 + $0x18] sm:$0xf0]  ;;  %v1246_v19 = vor.u32 %v1632_v9, %v1243_v11 }
  0x3d   : > { %414 = vmatpush.bf16.msra.mxu0 %v1258_v56  ;;  %v1233_v17 = vld [vmem:[%s1968_s14 + $0x80] sm:$0xf]  ;;  %v1631_v18 = vld [vmem:[%s1968_s14 + $0x84] sm:$0xf0]  ;;  %v1310_v20 = vor.u32 %v1617_v13, %v1309_v12  ;;  %v1630_v21 = vld [vmem:[%s1968_s14 + $0x84] sm:$0xf]  ;;  %v1314_v24 = vor.u32 %v1616_v14, %v1311_v15 }
  0x3e   : > { %428 = vmatpush.bf16.msra.mxu1 %v1262_v57  ;;  %v1235_v22 = vld [vmem:[%s1968_s14 + $0x88] sm:$0xf0]  ;;  %v1301_v23 = vld [vmem:[%s1968_s14] sm:$0xf]  ;;  %v1615_v25 = vld [vmem:[%s1968_s14 + $0x4] sm:$0xf0]  ;;  %v1234_v31 = vor.u32 %v1631_v18, %v1233_v17 }
  0x3f   : > { %528 = vmatpush.bf16.msra.mxu2 %v1326_v58  ;;  %542 = vmatpush.bf16.msra.mxu3 %v1330_v62  ;;  %v1614_v26 = vld [vmem:[%s1968_s14 + $0x4] sm:$0xf]  ;;  %v1303_v27 = vld [vmem:[%s1968_s14 + $0x8] sm:$0xf0]  ;;  %v1439_v28 = vld [vmem:[%s1968_s14 + $0x170] sm:$0xf]  ;;  %v1238_v35 = vor.u32 %v1630_v21, %v1235_v22  ;;  %v1302_v36 = vor.u32 %v1615_v25, %v1301_v23 }
  0x40   : > { %v1661_v29 = vld [vmem:[%s1968_s14 + $0x174] sm:$0xf0]  ;;  %v1660_v30 = vld [vmem:[%s1968_s14 + $0x174] sm:$0xf]  ;;  %v1441_v32 = vld [vmem:[%s1968_s14 + $0x178] sm:$0xf0]  ;;  %v1306_v39 = vor.u32 %v1614_v26, %v1303_v27 }
  0x41   : > { %415 = vmatpush.bf16.msra.mxu0 %v1250_v4  ;;  %v1519_v33 = vld [vmem:[%s1968_s14 + $0x1f0] sm:$0xf]  ;;  %v1677_v34 = vld [vmem:[%s1968_s14 + $0x1f4] sm:$0xf0]  ;;  %v1676_v37 = vld [vmem:[%s1968_s14 + $0x1f4] sm:$0xf]  ;;  %v1440_v40 = vor.u32 %v1661_v29, %v1439_v28  ;;  %v1444_v43 = vor.u32 %v1660_v30, %v1441_v32 }
  0x42   : > { %429 = vmatpush.bf16.msra.mxu1 %v1254_v5  ;;  %v1521_v38 = vld [vmem:[%s1968_s14 + $0x1f8] sm:$0xf0]  ;;  %v1431_v41 = vld [vmem:[%s1968_s14 + $0x160] sm:$0xf]  ;;  %v1659_v42 = vld [vmem:[%s1968_s14 + $0x164] sm:$0xf0]  ;;  %v1520_v44 = vor.u32 %v1677_v34, %v1519_v33 }
  0x43   : > { %529 = vmatpush.bf16.msra.mxu2 %v1318_v6  ;;  %543 = vmatpush.bf16.msra.mxu3 %v1322_v10  ;;  %v1658_v45 = vld [vmem:[%s1968_s14 + $0x164] sm:$0xf]  ;;  %v1433_v46 = vld [vmem:[%s1968_s14 + $0x168] sm:$0xf0]  ;;  %v1511_v47 = vld [vmem:[%s1968_s14 + $0x1e0] sm:$0xf]  ;;  %v1524_v48 = vor.u32 %v1676_v37, %v1521_v38  ;;  %v1432_v57 = vor.u32 %v1659_v42, %v1431_v41 }
  0x44   : > { %v1675_v49 = vld [vmem:[%s1968_s14 + $0x1e4] sm:$0xf0]  ;;  %v1674_v50 = vld [vmem:[%s1968_s14 + $0x1e4] sm:$0xf]  ;;  %v1513_v51 = vld [vmem:[%s1968_s14 + $0x1e8] sm:$0xf0]  ;;  %v1436_v58 = vor.u32 %v1658_v45, %v1433_v46 }
  0x45   : > { %416 = vmatpush.bf16.msra.mxu0 %v1242_v16  ;;  %v1423_v52 = vld [vmem:[%s1968_s14 + $0x150] sm:$0xf]  ;;  %v1657_v53 = vld [vmem:[%s1968_s14 + $0x154] sm:$0xf0]  ;;  %v1297_v54 = vld [vmem:[%s2277_s0] sm:$0xf]  ;;  %v1512_v2 = vor.u32 %v1675_v49, %v1511_v47  ;;  %v1516_v3 = vor.u32 %v1674_v50, %v1513_v51 }
  0x46   : > { %430 = vmatpush.bf16.msra.mxu1 %v1246_v19  ;;  %v1613_v55 = vld [vmem:[%s2277_s0 + $0x4] sm:$0xf0]  ;;  %v2065_v56 = vld [vmem:[%s2277_s0] sm:$0xf]  ;;  %v1656_v59 = vld [vmem:[%s1968_s14 + $0x154] sm:$0xf]  ;;  %v1424_v15 = vor.u32 %v1657_v53, %v1423_v52 }
  0x47   : > { %530 = vmatpush.bf16.msra.mxu2 %v1310_v20  ;;  %544 = vmatpush.bf16.msra.mxu3 %v1314_v24  ;;  %v1425_v60 = vld [vmem:[%s1968_s14 + $0x158] sm:$0xf0]  ;;  %v1503_v61 = vld [vmem:[%s1968_s14 + $0x1d0] sm:$0xf]  ;;  %v1298_v62 = vor.u32 %v1613_v55, %v1297_v54  ;;  %v2073_v63 = vld [vmem:[%s2277_s0 + $0x4] sm:$0x3] }
  0x48   : > { %v2078_v0 = vld [vmem:[%s2277_s0 + $0x8] sm:$0xf]  ;;  %v2083_v1 = vld [vmem:[%s2277_s0 + $0xc] sm:$0x3]  ;;  %v1673_v4 = vld [vmem:[%s1968_s14 + $0x1d4] sm:$0xf0]  ;;  %v1428_v20 = vor.u32 %v1656_v59, %v1425_v60 }
  0x49   : > { %417 = vmatpush.bf16.msra.mxu0 %v1234_v31  ;;  %v1672_v5 = vld [vmem:[%s1968_s14 + $0x1d4] sm:$0xf]  ;;  %v282_v6 = vshrl.u32 %v2065_v56, 16  ;;  %v285_v7 = vshll.u32 %v2065_v56, 16  ;;  %v1505_v8 = vld [vmem:[%s1968_s14 + $0x1d8] sm:$0xf0]  ;;  %v1504_v21 = vor.u32 %v1673_v4, %v1503_v61 }
  0x4a   : > { %431 = vmatpush.bf16.msra.mxu1 %v1238_v35  ;;  %v291_v9 = vshll.u32 %v2073_v63, 16  ;;  %v296_v10 = vshrl.u32 %v2078_v0, 16  ;;  %v299_v11 = vshll.u32 %v2078_v0, 16  ;;  %v305_v12 = vshll.u32 %v2083_v1, 16  ;;  %v1415_v16 = vld [vmem:[%s1968_s14 + $0x140] sm:$0xf] }
  0x4b   : > { %531 = vmatpush.bf16.msra.mxu2 %v1302_v36  ;;  %545 = vmatpush.bf16.msra.mxu3 %v1306_v39  ;;  %vm278_vm0 = vsmask.f32 3328  ;;  %vm279_vm1 = vsmask.f32 7440  ;;  %v284_v13 = vrot.slane %v282_v6, 4  ;;  %v287_v14 = vrot.slane %v285_v7, 5 }
  0x4c   : > { %v1655_v17 = vld [vmem:[%s1968_s14 + $0x144] sm:$0xf0]  ;;  %v298_v18 = vrot.slane %v296_v10, 4  ;;  %v301_v19 = vrot.slane %v299_v11, 5  ;;  %v1654_v22 = vld [vmem:[%s1968_s14 + $0x144] sm:$0xf]  ;;  %v1508_v26 = vor.u32 %v1672_v5, %v1505_v8  ;;  %vm2112_vm2 = vmor %vm278_vm0, %vm279_vm1 }
  0x4d   : > { %666 = vmatpush.bf16.msrb.mxu0 %v1440_v40  ;;  %v1417_v23 = vld [vmem:[%s1968_s14 + $0x148] sm:$0xf0]  ;;  %v288_v24 = vor.u32 %v287_v14, %v284_v13  ;;  %v293_v25 = vrot.slane %v291_v9, 5  ;;  %v1495_v27 = vld [vmem:[%s1968_s14 + $0x1c0] sm:$0xf]  ;;  %v307_v31 = vrot.slane %v305_v12, 5  ;;  %v1416_v35 = vor.u32 %v1655_v17, %v1415_v16 }
  0x4e   : > { %680 = vmatpush.bf16.msrb.mxu1 %v1444_v43  ;;  %532 = vmatmul.bf16.vlgmr.msra.gmra.mxu2 %v1298_v62  ;;  %v1671_v28 = vld [vmem:[%s1968_s14 + $0x1c4] sm:$0xf0]  ;;  %v302_v30 = vor.u32 %v301_v19, %v298_v18  ;;  %v1670_v32 = vld [vmem:[%s1968_s14 + $0x1c4] sm:$0xf]  ;;  %v1497_v33 = vld [vmem:[%s1968_s14 + $0x1c8] sm:$0xf0]  ;;  %v1420_v38 = vor.u32 %v1654_v22, %v1417_v23 }
  0x4f   : > { %822 = vmatpush.bf16.msrb.mxu2 %v1520_v44  ;;  %836 = vmatpush.bf16.msrb.mxu3 %v1524_v48  ;;  %v289_v34 = vrot.slane %v288_v24, 4  ;;  %v1407_v37 = vld [vmem:[%s1968_s14 + $0x130] sm:$0xf]  ;;  %v1496_v39 = vor.u32 %v1671_v28, %v1495_v27  ;;  %v1653_v41 = vld [vmem:[%s1968_s14 + $0x134] sm:$0xf0]  ;;  %v1500_v44 = vor.u32 %v1670_v32, %v1497_v33  ;;  %vm555_vm4 = vcmask 1046532  }
  0x50   : > { %546 = vmatmul.bf16.vlgmr.msra.gmra.mxu3 %v1298_v62  ;;  %v303_v36 = vrot.slane %v302_v30, 4  ;;  %v1652_v42 = vld [vmem:[%s1968_s14 + $0x134] sm:$0xf]  ;;  %v1409_v43 = vld [vmem:[%s1968_s14 + $0x138] sm:$0xf0]  ;;  %v1408_v52 = vor.u32 %v1653_v41, %v1407_v37  ;;  %v2142_v5 = vrot.slane %v291_v9, 6  ;;  %vm2155_vm5 = vmor %vm554_vm3, %vm555_vm4 }
  0x51   : > { %667 = vmatpush.bf16.msrb.mxu0 %v1432_v57  ;;  %v294_v40 = vsel %vm2112_vm2, %v289_v34, %v293_v25  ;;  %v1487_v47 = vld [vmem:[%s1968_s14 + $0x1b0] sm:$0xf]  ;;  %v1669_v48 = vld [vmem:[%s1968_s14 + $0x1b4] sm:$0xf0]  ;;  %v1668_v50 = vld [vmem:[%s1968_s14 + $0x1b4] sm:$0xf]  ;;  %v1412_v53 = vor.u32 %v1652_v42, %v1409_v43 }
  0x52   : > { %681 = vmatpush.bf16.msrb.mxu1 %v1436_v58  ;;  %v308_v45 = vsel %vm2112_vm2, %v303_v36, %v307_v31  ;;  %v326_v46 = vunpack.c.l.b16 %v294_v40  ;;  %v1489_v51 = vld [vmem:[%s1968_s14 + $0x1b8] sm:$0xf0]  ;;  %v1399_v54 = vld [vmem:[%s1968_s14 + $0x120] sm:$0xf]  ;;  %v1651_v55 = vld [vmem:[%s1968_s14 + $0x124] sm:$0xf0]  ;;  %v1488_v59 = vor.u32 %v1669_v48, %v1487_v47 }
  0x53   : > { %823 = vmatpush.bf16.msrb.mxu2 %v1512_v2  ;;  %837 = vmatpush.bf16.msrb.mxu3 %v1516_v3  ;;  %v327_v49 = vunpack.c.l.b16 %v308_v45  ;;  %v1650_v57 = vld [vmem:[%s1968_s14 + $0x124] sm:$0xf]  ;;  %v1401_v60 = vld [vmem:[%s1968_s14 + $0x128] sm:$0xf0]  ;;  %v1479_v61 = vld [vmem:[%s1968_s14 + $0x1a0] sm:$0xf]  ;;  %v1492_v62 = vor.u32 %v1668_v50, %v1489_v51 }
  0x54   : > { %v1667_v2 = vld [vmem:[%s1968_s14 + $0x1a4] sm:$0xf0]  ;;  %v1666_v3 = vld [vmem:[%s1968_s14 + $0x1a4] sm:$0xf]  ;;  %v1481_v4 = vld [vmem:[%s1968_s14 + $0x1a8] sm:$0xf0]  ;;  %v1404_v16 = vor.u32 %v1650_v57, %v1401_v60 }
  0x55   : > { %668 = vmatpush.bf16.msrb.mxu0 %v1424_v15  ;;  %v328_v58 = vpack.c.b16 %v327_v49, %v326_v46  ;;  %v2146_v8 = vrot.slane %v305_v12, 6  ;;  %v1391_v13 = vld [vmem:[%s1968_s14 + $0x110] sm:$0xf]  ;;  %v1649_v14 = vld [vmem:[%s1968_s14 + $0x114] sm:$0xf0]  ;;  %v1400_v15 = vor.u32 %v1651_v55, %v1399_v54  ;;  %v1363_v12 = vrot.slane %v2065_v56, 9 }
  0x56   : > { %682 = vmatpush.bf16.msrb.mxu1 %v1428_v20  ;;  %v1648_v17 = vld [vmem:[%s1968_s14 + $0x114] sm:$0xf]  ;;  %v1393_v18 = vld [vmem:[%s1968_s14 + $0x118] sm:$0xf0]  ;;  %v1471_v19 = vld [vmem:[%s1968_s14 + $0x190] sm:$0xf]  ;;  %v1484_v22 = vor.u32 %v1666_v3, %v1481_v4  ;;  %v1392_v27 = vor.u32 %v1649_v14, %v1391_v13 }
  0x57   : > { %824 = vmatpush.bf16.msrb.mxu2 %v1504_v21  ;;  %838 = vmatpush.bf16.msrb.mxu3 %v1508_v26  ;;  %v559_v20 = vrot.slane %v2073_v63, 5  ;;  %v1480_v21 = vor.u32 %v1667_v2, %v1479_v61  ;;  %v1665_v23 = vld [vmem:[%s1968_s14 + $0x194] sm:$0xf0]  ;;  %v1664_v24 = vld [vmem:[%s1968_s14 + $0x194] sm:$0xf]  ;;  %v1364_v25 = vrot.slane %v2078_v0, 9 }
  0x58   : > { %418 = vmatmul.bf16.vlgmr.msra.gmra.mxu0 %v328_v58  ;;  %432 = vmatmul.bf16.vlgmr.msra.gmra.mxu1 %v328_v58  ;;  %v563_v26 = vrot.slane %v2083_v1, 5  ;;  %v1473_v28 = vld [vmem:[%s1968_s14 + $0x198] sm:$0xf0]  ;;  %vm698_vm6 = vsmask.f32 2304  ;;  %v701_v29 = vrot.slane %v282_v6, 5 }
  0x59   : > { %669 = vmatpush.bf16.msrb.mxu0 %v1416_v35  ;;  %v702_v30 = vrot.slane %v285_v7, 6  ;;  %v1383_v31 = vld [vmem:[%s1968_s14 + $0x100] sm:$0xf]  ;;  %v560_v32 = vsel %vm2155_vm5, %v1363_v12, %v559_v20  ;;  %vm699_vm7 = vsmask.f32 6416  ;;  %v705_v33 = vshrl.u32 %v2073_v63, 16 }
  0x5a   : > { %683 = vmatpush.bf16.msrb.mxu1 %v1420_v38  ;;  %v711_v34 = vrot.slane %v296_v10, 5  ;;  %v1647_v35 = vld [vmem:[%s1968_s14 + $0x104] sm:$0xf0]  ;;  %v1646_v6 = vld [vmem:[%s1968_s14 + $0x104] sm:$0xf]  ;;  %v564_v7 = vsel %vm2155_vm5, %v1364_v25, %v563_v26  ;;  %v712_v37 = vrot.slane %v299_v11, 6  ;;  %v1396_v10 = vor.u32 %v1648_v17, %v1393_v18  ;;  %vm2189_vm8 = vmor %vm698_vm6, %vm699_vm7 }
  0x5b   : > { %825 = vmatpush.bf16.msrb.mxu2 %v1496_v39  ;;  %839 = vmatpush.bf16.msrb.mxu3 %v1500_v44  ;;  %v703_v36 = vor.u32 %v702_v30, %v701_v29  ;;  %v715_v38 = vshrl.u32 %v2083_v1, 16  ;;  %v1472_v39 = vor.u32 %v1665_v23, %v1471_v19  ;;  %v1385_v40 = vld [vmem:[%s1968_s14 + $0x108] sm:$0xf0]  ;;  %v1463_v41 = vld [vmem:[%s1968_s14 + $0x180] sm:$0xf]  ;;  %v707_v42 = vrot.slane %v705_v33, 5 }
  0x5c   : > { %v1476_v43 = vor.u32 %v1664_v24, %v1473_v28  ;;  %v1663_v44 = vld [vmem:[%s1968_s14 + $0x184] sm:$0xf0]  ;;  %v1662_v45 = vld [vmem:[%s1968_s14 + $0x184] sm:$0xf]  ;;  %v713_v47 = vor.u32 %v712_v37, %v711_v34  ;;  %v1465_v49 = vld [vmem:[%s1968_s14 + $0x188] sm:$0xf0]  ;;  %v1384_v55 = vor.u32 %v1647_v35, %v1383_v31  ;;  %v1388_v61 = vor.u32 %v1646_v6, %v1385_v40 }
  0x5d   : > { %670 = vmatpush.bf16.msrb.mxu0 %v1408_v52  ;;  %v704_v46 = vrot.slane %v703_v36, 4  ;;  %v717_v48 = vrot.slane %v715_v38, 5  ;;  %v1601_v50 = vld [vmem:[%s1968_s14 + $0x270] sm:$0xf]  ;;  %v1693_v51 = vld [vmem:[%s1968_s14 + $0x274] sm:$0xf0]  ;;  %v582_v52 = vunpack.c.l.b16 %v560_v32  ;;  %v709_v54 = vor.u32 %v2142_v5, %v707_v42 }
  0x5e   : > { %684 = vmatpush.bf16.msrb.mxu1 %v1412_v53  ;;  %v583_v53 = vunpack.c.l.b16 %v564_v7  ;;  %v1692_v57 = vld [vmem:[%s1968_s14 + $0x274] sm:$0xf]  ;;  %v1603_v58 = vld [vmem:[%s1968_s14 + $0x278] sm:$0xf0]  ;;  %v1468_v3 = vor.u32 %v1662_v45, %v1465_v49  ;;  %v1602_v4 = vor.u32 %v1693_v51, %v1601_v50  ;;  %v1691_v17 = vld [vmem:[%s1968_s14 + $0x264] sm:$0xf0] }
  0x5f   : > { %826 = vmatpush.bf16.msrb.mxu2 %v1488_v59  ;;  %840 = vmatpush.bf16.msrb.mxu3 %v1492_v62  ;;  %v714_v59 = vrot.slane %v713_v47, 4  ;;  %v719_v60 = vor.u32 %v2146_v8, %v717_v48  ;;  %v1464_v62 = vor.u32 %v1663_v44, %v1463_v41  ;;  %v710_v2 = vsel %vm2189_vm8, %v704_v46, %v709_v54  ;;  %v1690_v18 = vld [vmem:[%s1968_s14 + $0x264] sm:$0xf]  ;;  %v1595_v19 = vld [vmem:[%s1968_s14 + $0x268] sm:$0xf0]  ;;  %s1213_s6 = sshll.u32 %s1907_s19, 1 }
  0x60   : > { %v738_v13 = vunpack.c.l.b16 %v710_v2  ;;  %v1606_v14 = vor.u32 %v1692_v57, %v1603_v58  ;;  %v1598_v20 = vor.u32 %v1690_v18, %v1595_v19  ;;  %v1688_v23 = vld [vmem:[%s1968_s14 + $0x254] sm:$0xf]  ;;  %v1587_v24 = vld [vmem:[%s1968_s14 + $0x258] sm:$0xf0]  ;;  %v1687_v28 = vld [vmem:[%s1968_s14 + $0x244] sm:$0xf0] }
  0x61   : > { %671 = vmatpush.bf16.msrb.mxu0 %v1400_v15  ;;  %v720_v5 = vsel %vm2189_vm8, %v714_v59, %v719_v60  ;;  %v584_v15 = vpack.c.b16 %v583_v53, %v582_v52  ;;  %v1590_v26 = vor.u32 %v1688_v23, %v1587_v24  ;;  %v1686_v29 = vld [vmem:[%s1968_s14 + $0x244] sm:$0xf]  ;;  %v1579_v30 = vld [vmem:[%s1968_s14 + $0x248] sm:$0xf0]  ;;  %v1569_v33 = vld [vmem:[%s1968_s14 + $0x230] sm:$0xf] }
  0x62   : > { %685 = vmatpush.bf16.msrb.mxu1 %v1404_v16  ;;  %v739_v8 = vunpack.c.l.b16 %v720_v5  ;;  %v1593_v16 = vld [vmem:[%s1968_s14 + $0x260] sm:$0xf]  ;;  %v1582_v32 = vor.u32 %v1686_v29, %v1579_v30  ;;  %v1685_v34 = vld [vmem:[%s1968_s14 + $0x234] sm:$0xf0]  ;;  %v1684_v35 = vld [vmem:[%s1968_s14 + $0x234] sm:$0xf] }
  0x63   : > { %827 = vmatpush.bf16.msrb.mxu2 %v1480_v21  ;;  %841 = vmatpush.bf16.msrb.mxu3 %v1484_v22  ;;  %v1594_v12 = vor.u32 %v1691_v17, %v1593_v16  ;;  %v1585_v21 = vld [vmem:[%s1968_s14 + $0x250] sm:$0xf]  ;;  %v1689_v22 = vld [vmem:[%s1968_s14 + $0x254] sm:$0xf0]  ;;  %v1571_v6 = vld [vmem:[%s1968_s14 + $0x238] sm:$0xf0]  ;;  %v1570_v7 = vor.u32 %v1685_v34, %v1569_v33 }
  0x64   : > { %v740_v9 = vpack.c.b16 %v739_v8, %v738_v13  ;;  %v1586_v25 = vor.u32 %v1689_v22, %v1585_v21  ;;  %v1561_v36 = vld [vmem:[%s1968_s14 + $0x220] sm:$0xf]  ;;  %v1683_v37 = vld [vmem:[%s1968_s14 + $0x224] sm:$0xf0]  ;;  %v1574_v38 = vor.u32 %v1684_v35, %v1571_v6  ;;  %vm854_vm9 = vcmask 1041408   ;;  %p248_p6 = scmp.lt.s32.totalorder %s1213_s6, 3 }
  0x65   : > { %672 = vmatpush.bf16.msrb.mxu0 %v1392_v27  ;;  %v1577_v27 = vld [vmem:[%s1968_s14 + $0x240] sm:$0xf]  ;;  %vm855_vm10 = vcmask 1045508   ;;  %v1562_v40 = vor.u32 %v1683_v37, %v1561_v36  ;;  %v1525_v41 = vrot.slane %v2065_v56, 10  ;;  %v859_v42 = vrot.slane %v2073_v63, 6  ;;  %s1212_s11 = sshll.u32 %s1964_s7, 4 }
  0x66   : > { %686 = vmatpush.bf16.msrb.mxu1 %v1396_v10  ;;  %v1578_v31 = vor.u32 %v1687_v28, %v1577_v27  ;;  %v1682_v10 = vld [vmem:[%s1968_s14 + $0x224] sm:$0xf]  ;;  %v863_v44 = vrot.slane %v2083_v1, 6  ;;  %v1553_v11 = vld [vmem:[%s1968_s14 + $0x210] sm:$0xf]  ;;  %vm856_vm11 = vmor %vm854_vm9, %vm855_vm10  ;;  %v1857_v18 = vmov 16.0  }
  0x67   : > { %828 = vmatpush.bf16.msrb.mxu2 %v1472_v39  ;;  %842 = vmatpush.bf16.msrb.mxu3 %v1476_v43  ;;  %v1563_v39 = vld [vmem:[%s1968_s14 + $0x228] sm:$0xf0]  ;;  %v1526_v43 = vrot.slane %v2078_v0, 10  ;;  %v1681_v46 = vld [vmem:[%s1968_s14 + $0x214] sm:$0xf0]  ;;  %v860_v56 = vsel %vm856_vm11, %v1525_v41, %v859_v42  ;;  %1750 = vrcp.f32 %v1857_v18  ;;  %s2297_s6 = smov (!%p248_p6, %s1213_s6), 3 }
  0x68   : > { %v1566_v45 = vor.u32 %v1682_v10, %v1563_v39  ;;  %v1680_v47 = vld [vmem:[%s1968_s14 + $0x214] sm:$0xf]  ;;  %v1555_v48 = vld [vmem:[%s1968_s14 + $0x218] sm:$0xf0]  ;;  %v1554_v49 = vor.u32 %v1681_v46, %v1553_v11  ;;  %v1545_v51 = vld [vmem:[%s1968_s14 + $0x200] sm:$0xf]  ;;  %v882_v1 = vunpack.c.l.b16 %v860_v56  ;;  %s255_s9 = scalar_lea.vmem %s2280_s3, %s2297_s6 }
  0x69   : > { %673 = vmatpush.bf16.msrb.mxu0 %v1384_v55  ;;  %v864_v50 = vsel %vm856_vm11, %v1526_v43, %v863_v44  ;;  %v1558_v63 = vor.u32 %v1680_v47, %v1555_v48  ;;  %v1679_v0 = vld [vmem:[%s1968_s14 + $0x204] sm:$0xf0]  ;;  %v1678_v52 = vld [vmem:[%s1968_s14 + $0x204] sm:$0xf]  ;;  %v1547_v53 = vld [vmem:[%s1968_s14 + $0x208] sm:$0xf0]  ;;  %s250_s14 = scalar_lea.vmem %s2279_s2, %s2297_s6 }
  0x6a   : > { %687 = vmatpush.bf16.msrb.mxu1 %v1388_v61  ;;  %v883_v54 = vunpack.c.l.b16 %v864_v50  ;;  %v1546_v55 = vor.u32 %v1679_v0, %v1545_v51  ;;  %v1550_v57 = vor.u32 %v1678_v52, %v1547_v53  ;;  %s1694_s12 = sshll.u32 %s1907_s19, 3  ;;  %s245_s29 = scalar_lea.vmem [#allocation5], %s1212_s11 }
  0x6b   : > { %829 = vmatpush.bf16.msrb.mxu2 %v1464_v62  ;;  %843 = vmatpush.bf16.msrb.mxu3 %v1468_v3  ;;  %s1111_s23 = scalar_lea.hbm %s2281_s4, %s1694_s12  ;;  %s1112_s5 = sshll.u32 %s245_s29, 4  ;;  %s1113_s5 = int_to_ptr.vmem [resolvable:$true] %s1112_s5 }
  0x6c   : > { %674 = vmatmul.bf16.vlgmr.msrb.gmra.mxu0 %v584_v15  ;;  %v884_v58 = vpack.c.b16 %v883_v54, %v882_v1  ;;  %s1114_s19 = sshll.u32 %s1111_s23, 4  ;;  %s1100_s28 = scalar_lea.sflag [#allocation4], %s1964_s7  ;;  %s1115_s19 = int_to_ptr.hbm [resolvable:$true] %s1114_s19 }
  0x6d   : > { %966 = vmatpush.bf16.msra.mxu0 %v1602_v4  ;;  %688 = vmatmul.bf16.vlgmr.msrb.gmra.mxu1 %v584_v15  ;;  %v1751_v21 = vpop.eup %1750  ;;  %s1800_s30 = sshra.s32 %s1115_s19, 4  ;;  %s1801_s30 = int_to_ptr.hbm [resolvable:$true] %s1800_s30 }
  0x6e   : > { %980 = vmatpush.bf16.msra.mxu1 %v1606_v14  ;;  %830 = vmatmul.bf16.vlgmr.msrb.gmra.mxu2 %v740_v9  ;;  %v1013_v30 = vmul.f32 16.0, %v1751_v21  ;;  %vm1017_vm12 = vweird.f32 %v1751_v21  ;;  %s1802_s6 = scalar_lea.hbm %s1801_s30, 16  ;;  %p1807_p4 = scmp.lt.s32.totalorder %s1801_s30, %s2281_s4 }
  0x6f   : > { %844 = vmatmul.bf16.vlgmr.msrb.gmra.mxu3 %v740_v9  ;;  %p1803_p13 = scmp.ne.s32.totalorder %s1801_s30, %s1802_s6 }
  0x71   : > { %967 = vmatpush.bf16.msra.mxu0 %v1594_v12  ;;  %p1804_p0 = pnand %p1803_p13, %p1932_p11 }
  0x72   : > { %981 = vmatpush.bf16.msra.mxu1 %v1598_v20 }
  0x73   : > { %p1805_p3 = pneg %p1804_p0 }
  0x75   : > { %968 = vmatpush.bf16.msra.mxu0 %v1586_v25 }
  0x76   : > { %982 = vmatpush.bf16.msra.mxu1 %v1590_v26 }
  0x79   : > { %969 = vmatpush.bf16.msra.mxu0 %v1578_v31 }
  0x7a   : > { %983 = vmatpush.bf16.msra.mxu1 %v1582_v32 }
  0x7d   : > { %970 = vmatpush.bf16.msra.mxu0 %v1570_v7 }
  0x7e   : > { %984 = vmatpush.bf16.msra.mxu1 %v1574_v38  ;;  %v1014_v38 = vsub.f32 1.0, %v1013_v30 }
  0x80   : > { %v1015_v42 = vmul.f32 %v1751_v21, %v1014_v38 }
  0x81   : > { %971 = vmatpush.bf16.msra.mxu0 %v1562_v40 }
  0x82   : > { %985 = vmatpush.bf16.msra.mxu1 %v1566_v45  ;;  %v1016_v46 = vadd.f32 %v1751_v21, %v1015_v42 }
  0x84   : > { %v1018_v50 = vsel %vm1017_vm12, %v1751_v21, %v1016_v46 }
  0x85   : > { %972 = vmatpush.bf16.msra.mxu0 %v1554_v49 }
  0x86   : > { %986 = vmatpush.bf16.msra.mxu1 %v1558_v63 }
  0x89   : > { %973 = vmatpush.bf16.msra.mxu0 %v1546_v55 }
  0x8a   : > { %987 = vmatpush.bf16.msra.mxu1 %v1550_v57 }
  0x8c   : > { %974 = vmatmul.bf16.vlgmr.msra.gmra.mxu0 %v884_v58 }
  0x8d   : > { %988 = vmatmul.bf16.vlgmr.msra.gmra.mxu1 %v884_v58 }
  0xd1   : > { %v533_v2 = vpop.f32.mrf.mxu2 }
  0xd3   : > { %v547_v3 = vpop.f32.mrf.mxu3 }
  0xd5   : > { %v419_v59 = vpop.f32.mrf.mxu0  ;;  %v433_v60 = vpop.f32.mrf.mxu1 }
  0xd6   : > { %v534_v9 = vadd.f32 %v533_v2, %v419_v59  ;;  %v548_v20 = vadd.f32 %v547_v3, %v433_v60 }
  0xd9   : > { %v535_v13 = vpop.f32.mrf.mxu2 }
  0xdb   : > { %v549_v14 = vpop.f32.mrf.mxu3 }
  0xdd   : > { %v421_v61 = vpop.f32.mrf.mxu0  ;;  %v435_v62 = vpop.f32.mrf.mxu1 }
  0xde   : > { %v536_v22 = vadd.f32 %v535_v13, %v421_v61  ;;  %v550_v23 = vadd.f32 %v549_v14, %v435_v62 }
  0xe9   : > { %v675_v4 = vpop.f32.mrf.mxu0 }
  0xea   : > { %v689_v5 = vpop.f32.mrf.mxu1  ;;  %v694_v25 = vadd.f32 %v675_v4, %v534_v9 }
  0xeb   : > { %v695_v28 = vadd.f32 %v689_v5, %v548_v20 }
  0xf1   : > { %v677_v15 = vpop.f32.mrf.mxu0  ;;  %v831_v16 = vpop.f32.mrf.mxu2 }
  0xf2   : > { %v691_v8 = vpop.f32.mrf.mxu1  ;;  %v845_v17 = vpop.f32.mrf.mxu3  ;;  %v696_v26 = vadd.f32 %v677_v15, %v536_v22  ;;  %v850_v31 = vadd.f32 %v831_v16, %v694_v25 }
  0xf3   : > { %v697_v29 = vadd.f32 %v691_v8, %v550_v23  ;;  %v851_v33 = vadd.f32 %v845_v17, %v695_v28 }
  0xf9   : > { %v833_v24 = vpop.f32.mrf.mxu2 }
  0xfa   : > { %v847_v27 = vpop.f32.mrf.mxu3  ;;  %v852_v32 = vadd.f32 %v833_v24, %v696_v26 }
  0xfb   : > { %v853_v34 = vadd.f32 %v847_v27, %v697_v29 }
 0x109   : > { %v975_v19 = vpop.f32.mrf.mxu0 }
 0x10a   : > { %v989_v12 = vpop.f32.mrf.mxu1  ;;  %v994_v6 = vadd.f32 %v975_v19, %v850_v31 }
 0x10b   : > { %v995_v37 = vadd.f32 %v989_v12, %v851_v33 }
 0x111   : > { %v977_v35 = vpop.f32.mrf.mxu0 }
 0x112   : > { %v996_v7 = vadd.f32 %v977_v35, %v852_v32  ;;  %v991_v36 = vpop.f32.mrf.mxu1  ;;  %v1071_v32 = vld [vmem:[%s250_s14] sm:$0x3]  ;;  %s1806_s14 = scalar_lea.hbm %s2281_s4, 32 }
 0x113   : > { %v997_v10 = vadd.f32 %v991_v36, %v853_v34  ;;  %v1081_v35 = vld [vmem:[%s255_s9] sm:$0x3]  ;;  %p1808_p5 = scmp.lt.s32.totalorder %s1806_s14, %s1802_s6 }
 0x114   : > { %v998_v39 = vadd.f32 %v996_v7, %v994_v6 }
 0x115   : > { %v1005_v40 = vadd.f32 %v997_v10, %v995_v37  ;;  %p1809_p7 = por %p1808_p5, %p1807_p4 }
 0x116   : > { %v999_v41 = vrot.slane %v998_v39, 4 }
 0x117   : > { %v1006_v43 = vrot.slane %v1005_v40, 4  ;;  %p1810_p8 = pnand %p1809_p7, %p1805_p3 }
 0x118   : > { %v1000_v44 = vadd.f32 %v999_v41, %v998_v39  ;;  %v1083_v39 = vperm.slane %v1081_v35, 0 }
 0x119   : > { %v1007_v45 = vadd.f32 %v1006_v43, %v1005_v40  ;;  %v1084_v43 = vperm.slane %v1081_v35, 1 }
 0x11a   : > { %v1001_v11 = vrot.slane %v1000_v44, 2 }
 0x11b   : > { %v1008_v47 = vrot.slane %v1007_v45, 2 }
 0x11c   : > { %v1002_v48 = vadd.f32 %v1001_v11, %v1000_v44 }
 0x11d   : > { %v1009_v49 = vadd.f32 %v1008_v47, %v1007_v45 }
 0x11e   : > { %v1003_v56 = vrot.slane %v1002_v48, 1 }
 0x11f   : > { %v1010_v63 = vrot.slane %v1009_v49, 1 }
 0x120   : > { %v1004_v51 = vadd.f32 %v1003_v56, %v1002_v48 }
 0x121   : > { %v1011_v0 = vadd.f32 %v1010_v63, %v1009_v49 }
 0x122   : > { %v1019_v52 = vmul.f32 %v1018_v50, %v1004_v51 }
 0x123   : > { %v1020_v53 = vmul.f32 %v1018_v50, %v1011_v0 }
 0x124   : > { %v1021_v1 = vsub.f32 %v994_v6, %v1019_v52  ;;  %v1023_v54 = vsub.f32 %v996_v7, %v1019_v52  ;;  %v1073_v6 = vperm.slane %v1071_v32, 0 }
 0x125   : > { %v1022_v55 = vsub.f32 %v995_v37, %v1020_v53  ;;  %v1024_v57 = vsub.f32 %v997_v10, %v1020_v53  ;;  %v1074_v37 = vperm.slane %v1071_v32, 1 }
 0x126   : > { %v1025_v58 = vmul.f32 %v1021_v1, %v1021_v1  ;;  %v1027_v59 = vmul.f32 %v1023_v54, %v1023_v54 }
 0x127   : > { %v1026_v60 = vmul.f32 %v1022_v55, %v1022_v55  ;;  %v1028_v61 = vmul.f32 %v1024_v57, %v1024_v57 }
 0x128   : > { %v1029_v62 = vadd.f32 %v1027_v59, %v1025_v58 }
 0x129   : > { %v1036_v2 = vadd.f32 %v1028_v61, %v1026_v60 }
 0x12a   : > { %v1030_v3 = vrot.slane %v1029_v62, 4 }
 0x12b   : > { %v1037_v4 = vrot.slane %v1036_v2, 4 }
 0x12c   : > { %v1031_v5 = vadd.f32 %v1030_v3, %v1029_v62 }
 0x12d   : > { %v1038_v13 = vadd.f32 %v1037_v4, %v1036_v2 }
 0x12e   : > { %v1032_v14 = vrot.slane %v1031_v5, 2 }
 0x12f   : > { %v1039_v15 = vrot.slane %v1038_v13, 2 }
 0x130   : > { %v1033_v8 = vadd.f32 %v1032_v14, %v1031_v5 }
 0x131   : > { %v1040_v16 = vadd.f32 %v1039_v15, %v1038_v13 }
 0x132   : > { %v1034_v17 = vrot.slane %v1033_v8, 1 }
 0x133   : > { %v1041_v18 = vrot.slane %v1040_v16, 1 }
 0x134   : > { %v1035_v19 = vadd.f32 %v1034_v17, %v1033_v8 }
 0x135   : > { %v1042_v9 = vadd.f32 %v1041_v18, %v1040_v16 }
 0x136   : > { %v1043_v12 = vmul.f32 %v1035_v19, %v1018_v50 }
 0x137   : > { %v1044_v20 = vmul.f32 %v1042_v9, %v1018_v50 }
 0x138   : > { %v1045_v21 = vadd.f32 1e-05, %v1043_v12 }
 0x139   : > { %v1046_v22 = vadd.f32 1e-05, %v1044_v20 }
 0x13a   : > { %1752 = vrsqrt.f32 %v1045_v21  ;;  %vm1053_vm15 = vweird.f32 %v1045_v21 }
 0x13b   : > { %1754 = vrsqrt.f32 %v1046_v22  ;;  %vm1063_vm1 = vweird.f32 %v1046_v22 }
 0x140   : > { %v1753_v23 = vpop.eup %1752 }
 0x141   : > { %v1755_v24 = vpop.eup %1754  ;;  %v1048_v25 = vmul.f32 %v1753_v23, %v1045_v21  ;;  %vm1054_vm13 = vweird.f32 %v1753_v23 }
 0x142   : > { %v1058_v26 = vmul.f32 %v1755_v24, %v1046_v22  ;;  %vm1064_vm14 = vweird.f32 %v1755_v24  ;;  %vm1055_vm0 = vmor %vm1053_vm15, %vm1054_vm13 }
 0x143   : > { %v1049_v27 = vmul.f32 %v1753_v23, %v1048_v25  ;;  %vm1065_vm2 = vmor %vm1063_vm1, %vm1064_vm14 }
 0x144   : > { %v1059_v28 = vmul.f32 %v1755_v24, %v1058_v26 }
 0x145   : > { %v1050_v29 = vmul.f32 0.5, %v1049_v27 }
 0x146   : > { %v1060_v30 = vmul.f32 0.5, %v1059_v28 }
 0x147   : > { %v1051_v31 = vsub.f32 1.5, %v1050_v29 }
 0x148   : > { %v1061_v33 = vsub.f32 1.5, %v1060_v30 }
 0x149   : > { %v1052_v34 = vmul.f32 %v1753_v23, %v1051_v31 }
 0x14a   : > { %v1062_v7 = vmul.f32 %v1755_v24, %v1061_v33 }
 0x14b   : > { %v1056_v36 = vsel %vm1055_vm0, %v1753_v23, %v1052_v34 }
 0x14c   : > { %v1067_v38 = vmul.f32 %v1056_v36, %v1021_v1  ;;  %v1069_v10 = vmul.f32 %v1056_v36, %v1023_v54  ;;  %v1066_v40 = vsel %vm1065_vm2, %v1755_v24, %v1062_v7 }
 0x14d   : > { %v1068_v41 = vmul.f32 %v1066_v40, %v1022_v55  ;;  %v1070_v42 = vmul.f32 %v1066_v40, %v1024_v57 }
 0x14e   : > { %v1077_v44 = vmul.f32 %v1073_v6, %v1067_v38  ;;  %v1079_v45 = vmul.f32 %v1073_v6, %v1069_v10 }
 0x14f   : > { %v1078_v11 = vmul.f32 %v1074_v37, %v1068_v41  ;;  %v1080_v46 = vmul.f32 %v1074_v37, %v1070_v42 }
 0x150   : > { %v1087_v47 = vadd.f32 %v1083_v39, %v1077_v44  ;;  %v1089_v48 = vadd.f32 %v1083_v39, %v1079_v45 }
 0x151   : > { %v1088_v49 = vadd.f32 %v1084_v43, %v1078_v11  ;;  %v1090_v56 = vadd.f32 %v1084_v43, %v1080_v46 }
 0x152   : > { %v1091_v50 = vmax.f32 %v1087_v47, 0.0  ;;  %v1093_v63 = vmax.f32 %v1089_v48, 0.0 }
 0x153   : > { %v1092_v51 = vmax.f32 %v1088_v49, 0.0  ;;  %v1094_v0 = vmax.f32 %v1090_v56, 0.0 }
 0x155   : > { %v1095_v52 = vpack.c.bf16 %v1092_v51, %v1091_v50  ;;  %v1096_v53 = vpack.c.bf16 %v1094_v0, %v1093_v63 }
 0x157   : > { %1097 = vst [vmem:[%s245_s29] sm:$0xff] %v1095_v52 }
 0x158   : > { %1098 = vst [vmem:[%s245_s29 + $0x8] sm:$0xff] %v1096_v53 }
 0x159   : > { %1813 = shalt.err (!%p1810_p8)
}
 0x15a   : > { %s1858_s7 = smov 128   ;;  %s1859_s9 = smov 256  }
 0x15b   : > { %s1860_s11 = smov 8  }
 0x15c   : > { %1699 = dma.vmem_to_hbm [thread:$0]  (%p1932_p11), %s1113_s5, 256, %s1115_s19, %s1100_s28, %s1858_s7, %s1859_s9, %s1860_s11  }
 0x15d PF: > { %s1129_s12 = sand.u32 1, %s1840_s15   ;;  %p1706_p10 = pnand %p1208_p9, %p1936_p12 }
 0x15e   : > { %s1130_s20 = scalar_lea.sflag [#allocation4], %s1129_s12 }
 0x15f   : > { %p1707_p1 = pneg %p1706_p10 }
 0x161   : > { %1835 = dma.done.wait (%p1707_p1), %s1130_s20, 256  }
 0x162   : > { %1837 = vsyncadd (%p1707_p1), %s1130_s20, 4294967040  ;;  %p17_p2 = scmp.ge.s32.totalorder %s1911_s21, 4   ;;  %s2292_s15 = smov %s1844_s16 }
 0x163   : > { %s2293_s16 = smov %s1848_s17  ;;  %s2294_s17 = smov %s1923_s24 }
 0x164   : > { %s2295_s18 = smov %s1911_s21  ;;  %19 = sbr.rel (!%p17_p2) target bundleno = 5 (0x5), region = 91 }
 0x169   :  { %1136 = vsyncpa [#allocation3], 1 }
 0x16a   :  { %1138 = vsyncpa [#allocation3 + $0x1], 1 }
 0x16b   :  { %1139 = vsyncpa [#allocation4], 1 }
 0x16c   :  { %1141 = vsyncpa [#allocation4 + $0x1], 1 }

</bundles_post_ra>
